<compile_context>
chip_gen: v7x
topology: tpu7x:2x2x1
jax: 0.10.0
libtpu: 0.0.40
codegen_flags: <defaults>
</compile_context>

<pallas_src>
import math

import jax
import jax.numpy as jnp
from jax.experimental import pallas as pl
from jax.experimental.pallas import tpu as pltpu

LEAKY = 0.1
EPS = 1e-5


def _bias_act(z, b):
    z = z + b
    return jnp.where(z > 0, z, LEAKY * z)


# ------------------------------- fused kernel -------------------------------

def _make_kernel(ipb, Hh, Wh, Cm, Do):
    R = ipb * Hh            # matmul M dim: rows = (image, output row)
    L1 = Wh * Cm            # lanes of a stage-1/2 activation row
    # Lo = Wh * Do          # lanes of a stage-2/3 activation row (=128 here)

    def kernel(x_ref, y_ref, w1_ref, b1_ref, w2_ref, b2_ref,
               w3x_ref, w3y_ref, b3_ref, o_ref, y1p_ref):
        # ---- stage 1: AvgPool2d(2,2) + proj1 (1x1) + BN + LeakyReLU ------------
        # One matmul: the 4 pooled taps, the 1/4 factor, the BN scale and the
        # block-diagonal spatial structure are all folded into w1_ref (K = 4*Wh*C2).
        z1 = jnp.dot(y_ref[...], w1_ref[...], preferred_element_type=jnp.float32)
        z1 = _bias_act(z1, b1_ref[...])                      # (R, Wh*Cm) f32

        # ---- stage-2 input: y1 rows + per-image zero ROW padding in VMEM --------
        # rows 6..7 : top zero border (row 7 is read)
        # rows 8..8+Hh-1 : interior (packed-sublane-aligned bf16 store)
        # rows 8+Hh..9+Hh : bottom zero border (row 8+Hh is read)
        # Column padding never materializes: it is folded into w2_ref's band.
        # Borders are re-zeroed every step (cheap) so no cross-iteration state is
        # needed and the "parallel" grid axis stays safe on multi-core splits.
        zpad = jnp.zeros((ipb, 2, L1), jnp.bfloat16)
        y1p_ref[:, 6:8, :] = zpad
        y1p_ref[:, 8 + Hh:10 + Hh, :] = zpad
        y1p_ref[:, 8:8 + Hh, :] = z1.astype(jnp.bfloat16).reshape(ipb, Hh, L1)

        # ---- stage 2: proj2 (3x3, SAME) + BN + LeakyReLU -------------------------
        # One banded matmul per row tap dh (K = Wh*Cm), accumulated in registers.
        z2 = jnp.dot(y1p_ref[:, 7:7 + Hh, :].reshape(R, L1), w2_ref[0],
                     preferred_element_type=jnp.float32)
        for dh in (1, 2):
            rows = y1p_ref[:, 7 + dh:7 + dh + Hh, :].reshape(R, L1)
            z2 = z2 + jnp.dot(rows, w2_ref[dh], preferred_element_type=jnp.float32)
        z2 = _bias_act(z2, b2_ref[...])                      # (R, Wh*Do) f32

        # ---- stage 3: proj3(cat([x, y2])) + BN + LeakyReLU -----------------------
        # The concat never materializes: x @ W3x + y2 @ W3y (both block-diagonal).
        z3 = (jnp.dot(x_ref[...], w3x_ref[...], preferred_element_type=jnp.float32)
              + jnp.dot(z2.astype(jnp.bfloat16), w3y_ref[...],
                        preferred_element_type=jnp.float32))
        o_ref[...] = _bias_act(z3, b3_ref[...]).astype(o_ref.dtype)   # lane-dense store

    return kernel


# --------------------------- wrapper-side weight prep ------------------------

def _banded_weights(params, Wh):
    """Fold avg-pool, BN scales and the conv spatial structure into small
    block-diagonal / banded bf16 weights for the row-lane layout."""
    w1 = params["w1"]
    C2, Cm = w1.shape
    w2 = params["w2"]
    Do = w2.shape[-1]
    eye = jnp.eye(Wh, dtype=jnp.float32)

    # proj1: 1/4 (avg pool), the two pooled columns (stacked w1), BN scale,
    # block-diagonal over output column w; stacked twice for the two pooled rows.
    w1q = 0.25 * jnp.concatenate([w1, w1], axis=0) * params["s1"]        # (2*C2, Cm)
    w1d = jnp.kron(eye, w1q)                                             # (Wh*2*C2, Wh*Cm)
    w1b = jnp.concatenate([w1d, w1d], axis=0)                            # (4*Wh*C2, Wh*Cm)

    # proj2: one banded weight per row tap dh; the 3 column taps dw become the
    # (off-)diagonal blocks.  Out-of-range blocks are simply absent, which is exactly
    # the zero column padding of the SAME conv.
    w2s = w2 * params["s2"].reshape(1, 1, 1, Do)                         # (3,3,Cm,Do)
    w2b = jnp.stack([
        sum(jnp.kron(jnp.eye(Wh, k=1 - dw, dtype=jnp.float32), w2s[dh, dw])
            for dw in range(3))
        for dh in range(3)])                                             # (3, Wh*Cm, Wh*Do)

    # proj3: block-diagonal over w, split into the x / y halves of the concat.
    w3xb = jnp.kron(eye, params["w3x"] * params["s3"])                   # (Wh*C1, Wh*Do)
    w3yb = jnp.kron(eye, params["w3y"] * params["s3"])                   # (Wh*Do, Wh*Do)

    b1r = jnp.tile(params["b1"], (1, Wh))                                # (1, Wh*Cm)
    b2r = jnp.tile(params["b2"], (1, Wh))                                # (1, Wh*Do)
    b3r = jnp.tile(params["b3"], (1, Wh))                                # (1, Wh*Do)

    bf = lambda a: a.astype(jnp.bfloat16)
    return bf(w1b), b1r, bf(w2b), b2r, bf(w3xb), bf(w3yb), b3r


def _num_grid_steps(batch, images_per_step_cap=64):
    """>= 2 steps when possible (both v7x TensorCores get work through the "parallel"
    axis) while capping the per-step image batch (VMEM footprint is ~tens of KB/image,
    far under v7x's 64 MiB / 32 MiB-scoped VMEM even at the cap)."""
    if batch == 1:
        return 1
    for s in range(2, batch + 1):
        if batch % s == 0 and batch // s <= images_per_step_cap:
            return s
    return batch


# --------------------------------- wrapper ----------------------------------

def pool_proj_cat_proj_forward(x_nchw, y_nchw, params):
    """x: (B, input_1, H/2, W/2) NCHW, y: (B, input_2, H, W) NCHW."""
    B, C1, Hh, Wh = x_nchw.shape
    _, C2, H, W = y_nchw.shape
    Cm = params["w1"].shape[1]
    Do = params["w3y"].shape[0]

    # bf16 HBM inputs; free reshapes after the NHWC transpose:
    #   x row layout: lane = w*C1 + c1
    #   y row layout: lane = r*(2*Wh*C2) + wh*(2*C2) + q*C2 + c2   (r, q = 2x2 pool taps)
    x = jnp.transpose(x_nchw.astype(jnp.bfloat16), (0, 2, 3, 1)).reshape(B * Hh, Wh * C1)
    y = jnp.transpose(y_nchw.astype(jnp.bfloat16), (0, 2, 3, 1)).reshape(B * Hh, 4 * Wh * C2)

    w1b, b1r, w2b, b2r, w3xb, w3yb, b3r = _banded_weights(params, Wh)

    steps = _num_grid_steps(B)
    ipb = B // steps                      # images per grid step

    flops = 2 * B * Hh * ((4 * Wh * C2) * (Wh * Cm)      # stage 1
                          + 3 * (Wh * Cm) * (Wh * Do)    # stage 2 (3 row taps)
                          + (Wh * C1) * (Wh * Do)        # stage 3, x half
                          + (Wh * Do) * (Wh * Do))       # stage 3, y half
    bytes_accessed = (2 * (x.size + y.size)
                      + 4 * B * Hh * Wh * Do
                      + 2 * (w1b.size + w2b.size + w3xb.size + w3yb.size)
                      + 4 * (b1r.size + b2r.size + b3r.size))

    row = lambda b: (b, 0)
    rep2 = lambda b: (0, 0)
    rep3 = lambda b: (0, 0, 0)

    out = pl.pallas_call(
        _make_kernel(ipb, Hh, Wh, Cm, Do),
        grid=(steps,),
        in_specs=[
            pl.BlockSpec((ipb * Hh, Wh * C1), row),        # x rows
            pl.BlockSpec((ipb * Hh, 4 * Wh * C2), row),    # y rows (2x2 pool taps in lanes)
            pl.BlockSpec(w1b.shape, rep2),                 # proj1 banded weight
            pl.BlockSpec((1, Wh * Cm), rep2),              # proj1 bias row
            pl.BlockSpec(w2b.shape, rep3),                 # proj2 banded weights (3 row taps)
            pl.BlockSpec((1, Wh * Do), rep2),              # proj2 bias row
            pl.BlockSpec(w3xb.shape, rep2),                # proj3 weight, x half
            pl.BlockSpec(w3yb.shape, rep2),                # proj3 weight, y half
            pl.BlockSpec((1, Wh * Do), rep2),              # proj3 bias row
        ],
        out_specs=pl.BlockSpec((ipb * Hh, Wh * Do), row),  # lane-dense (.., 128) output
        out_shape=jax.ShapeDtypeStruct((B * Hh, Wh * Do), jnp.float32),
        scratch_shapes=[
            # per-image row-padded y1: rows 6..7 / 8+Hh..9+Hh are the zero borders,
            # rows 8..8+Hh-1 the interior (packed-sublane aligned for bf16).
            pltpu.VMEM((ipb, Hh + 10, Wh * Cm), jnp.bfloat16),
        ],
        compiler_params=pltpu.CompilerParams(
            dimension_semantics=("parallel",),
            vmem_limit_bytes=32 * 1024 * 1024,
        ),
        cost_estimate=pl.CostEstimate(flops=flops, transcendentals=0,
                                      bytes_accessed=bytes_accessed),
    )(x, y, w1b, b1r, w2b, b2r, w3xb, w3yb, b3r)

    out = out.reshape(B, Hh, Wh, Do)          # free reshape (lane = w*Do + co)
    return jnp.transpose(out, (0, 3, 1, 2))   # back to NCHW


# ----------------------- deterministic parameter init -----------------------

def init_params(key, input_1, input_2, do):
    Cm = do // 2
    ks = jax.random.split(key, 6)

    def bn_fold(k4, c):
        kg, kb, km, kv = jax.random.split(k4, 4)
        gamma = 1.0 + 0.1 * jax.random.normal(kg, (c,), jnp.float32)
        beta = 0.1 * jax.random.normal(kb, (c,), jnp.float32)
        mean = 0.1 * jax.random.normal(km, (c,), jnp.float32)
        var = jax.random.uniform(kv, (c,), jnp.float32, minval=0.5, maxval=1.5)
        scale = gamma / jnp.sqrt(var + EPS)
        bias = beta - mean * scale
        return scale.reshape(1, c), bias.reshape(1, c)

    w1 = jax.random.normal(ks[0], (input_2, Cm), jnp.float32) / math.sqrt(input_2)
    w2 = jax.random.normal(ks[1], (3, 3, Cm, do), jnp.float32) / math.sqrt(9 * Cm)
    w3 = jax.random.normal(ks[2], (input_1 + do, do), jnp.float32) / math.sqrt(input_1 + do)
    s1, b1 = bn_fold(ks[3], Cm)
    s2, b2 = bn_fold(ks[4], do)
    s3, b3 = bn_fold(ks[5], do)

    return dict(
        w1=w1, s1=s1, b1=b1,
        w2=w2, s2=s2, b2=b2,
        w3x=w3[:input_1], w3y=w3[input_1:], s3=s3, b3=b3,
    )


# ----------------------------- pure-JAX reference ---------------------------

def reference_forward(x_nchw, y_nchw, params):
    # Mirrors the kernel's rounding points: bf16 inputs, BN scale folded into the
    # bf16 conv weights, f32 accumulation, f32 bias + LeakyReLU.
    dn = ("NHWC", "HWIO", "NHWC")
    x = jnp.transpose(x_nchw, (0, 2, 3, 1)).astype(jnp.bfloat16).astype(jnp.float32)
    y = jnp.transpose(y_nchw, (0, 2, 3, 1)).astype(jnp.bfloat16).astype(jnp.float32)
    B, H, W, C2 = y.shape
    yp = jnp.mean(y.reshape(B, H // 2, 2, W // 2, 2, C2), axis=(2, 4))

    def cbr(inp, w_hwio, scale, bias, pad):
        w = (w_hwio * scale).astype(jnp.bfloat16)
        z = jax.lax.conv_general_dilated(
            inp.astype(jnp.bfloat16), w, (1, 1), pad,
            dimension_numbers=dn, preferred_element_type=jnp.float32)
        z = z + bias
        return jnp.where(z > 0, z, LEAKY * z)

    y1 = cbr(yp, params["w1"][None, None], params["s1"], params["b1"], "VALID")
    y2 = cbr(y1, params["w2"], params["s2"], params["b2"], "SAME")
    w3 = jnp.concatenate([params["w3x"], params["w3y"]], axis=0)[None, None]
    out = cbr(jnp.concatenate([x, y2], axis=-1), w3, params["s3"], params["b3"], "VALID")
    return jnp.transpose(out, (0, 3, 1, 2))


# ----------------------------------- main ------------------------------------

if __name__ == "__main__":
    input_1, input_2, do = 8, 8, 16
    B, H, W = 4, 16, 16                     # y spatial; x spatial = H/2 x W/2

    key = jax.random.PRNGKey(0)
    kx, ky, kp = jax.random.split(key, 3)
    x = jax.random.normal(kx, (B, input_1, H // 2, W // 2), jnp.float32)
    y = jax.random.normal(ky, (B, input_2, H, W), jnp.float32)
    params = init_params(kp, input_1, input_2, do)

    fwd = jax.jit(pool_proj_cat_proj_forward)
    out = jax.block_until_ready(fwd(x, y, params))

    assert out.shape == (B, do, H // 2, W // 2), out.shape
    ref = reference_forward(x, y, params)
    max_err = float(jnp.max(jnp.abs(out - ref)))
    assert max_err < 2e-2, f"max abs err {max_err}"

    print("KERNEL_OK")
</pallas_src>

<mosaic_0001>
module attributes {stable_mosaic.version = 11 : i64} {
  func.func @kernel(%arg0: i32, %arg1: memref<16x64xbf16, #tpu.memory_space<vmem>>, %arg2: memref<16x256xbf16, #tpu.memory_space<vmem>>, %arg3: memref<256x64xbf16, #tpu.memory_space<vmem>>, %arg4: memref<1x64xf32, #tpu.memory_space<vmem>>, %arg5: memref<3x64x128xbf16, #tpu.memory_space<vmem>>, %arg6: memref<1x128xf32, #tpu.memory_space<vmem>>, %arg7: memref<64x128xbf16, #tpu.memory_space<vmem>>, %arg8: memref<128x128xbf16, #tpu.memory_space<vmem>>, %arg9: memref<1x128xf32, #tpu.memory_space<vmem>>, %arg10: memref<16x128xf32, #tpu.memory_space<vmem>>, %arg11: memref<2x18x64xbf16, #tpu.memory_space<vmem>>) attributes {dimension_semantics = [#tpu.dimension_semantics<parallel>], iteration_bounds = array<i64: 2>, scalar_prefetch = 0 : i64, scratch_operands = 1 : i64, tpu.core_type = #tpu.core_type<tc>, window_params = [{transform_indices = @transform_0, window_bounds = array<i64: 16, 64>}, {transform_indices = @transform_1, window_bounds = array<i64: 16, 256>}, {pipeline_mode = #tpu.pipeline_mode<synchronous>, transform_indices = @transform_2, window_bounds = array<i64: 256, 64>}, {pipeline_mode = #tpu.pipeline_mode<synchronous>, transform_indices = @transform_3, window_bounds = array<i64: 1, 64>}, {pipeline_mode = #tpu.pipeline_mode<synchronous>, transform_indices = @transform_4, window_bounds = array<i64: 3, 64, 128>}, {pipeline_mode = #tpu.pipeline_mode<synchronous>, transform_indices = @transform_5, window_bounds = array<i64: 1, 128>}, {pipeline_mode = #tpu.pipeline_mode<synchronous>, transform_indices = @transform_6, window_bounds = array<i64: 64, 128>}, {pipeline_mode = #tpu.pipeline_mode<synchronous>, transform_indices = @transform_7, window_bounds = array<i64: 128, 128>}, {pipeline_mode = #tpu.pipeline_mode<synchronous>, transform_indices = @transform_8, window_bounds = array<i64: 1, 128>}, {transform_indices = @transform_9, window_bounds = array<i64: 16, 128>}]} {
    %c0 = arith.constant 0 : index
    %c0_0 = arith.constant 0 : index
    %0 = vector.load %arg2[%c0, %c0_0] : memref<16x256xbf16, #tpu.memory_space<vmem>>, vector<16x256xbf16>
    %c0_1 = arith.constant 0 : index
    %c0_2 = arith.constant 0 : index
    %1 = vector.load %arg3[%c0_1, %c0_2] : memref<256x64xbf16, #tpu.memory_space<vmem>>, vector<256x64xbf16>
    %cst = arith.constant dense<0.000000e+00> : vector<16x64xf32>
    %2 = tpu.matmul %0, %1, %cst {dimension_numbers = #tpu.dot_dimension_numbers<[1], [0], [0], [1], [0, 0, 1, 1], [], []>} : vector<16x256xbf16>, vector<256x64xbf16>, vector<16x64xf32> -> vector<16x64xf32>
    %c0_3 = arith.constant 0 : index
    %c0_4 = arith.constant 0 : index
    %3 = vector.load %arg4[%c0_3, %c0_4] : memref<1x64xf32, #tpu.memory_space<vmem>>, vector<1x64xf32>
    %4 = vector.broadcast %3 : vector<1x64xf32> to vector<16x64xf32>
    %5 = arith.addf %2, %4 : vector<16x64xf32>
    %cst_5 = arith.constant 0.000000e+00 : f32
    %6 = vector.broadcast %cst_5 : f32 to vector<16x64xf32>
    %7 = arith.cmpf ogt, %5, %6 : vector<16x64xf32>
    %cst_6 = arith.constant 1.000000e-01 : f32
    %8 = vector.broadcast %cst_6 : f32 to vector<16x64xf32>
    %9 = arith.mulf %8, %5 : vector<16x64xf32>
    %10 = arith.select %7, %5, %9 : vector<16x64xi1>, vector<16x64xf32>
    %cst_7 = arith.constant 0.000000e+00 : bf16
    %11 = vector.broadcast %cst_7 : bf16 to vector<2x2x64xbf16>
    %c0_8 = arith.constant 0 : index
    %c6 = arith.constant 6 : index
    %c0_9 = arith.constant 0 : index
    %12 = vector.load %arg11[%c0_8, %c6, %c0_9] : memref<2x18x64xbf16, #tpu.memory_space<vmem>>, vector<2x2x64xbf16>
    tpu.vector_store %arg11[%c0_8, %c6, %c0_9], %11 {strides = array<i32>} : memref<2x18x64xbf16, #tpu.memory_space<vmem>>, vector<2x2x64xbf16>,
    %c0_10 = arith.constant 0 : index
    %c16 = arith.constant 16 : index
    %c0_11 = arith.constant 0 : index
    %13 = vector.load %arg11[%c0_10, %c16, %c0_11] : memref<2x18x64xbf16, #tpu.memory_space<vmem>>, vector<2x2x64xbf16>
    tpu.vector_store %arg11[%c0_10, %c16, %c0_11], %11 {strides = array<i32>} : memref<2x18x64xbf16, #tpu.memory_space<vmem>>, vector<2x2x64xbf16>,
    %14 = arith.truncf %10 : vector<16x64xf32> to vector<16x64xbf16>
    %15 = vector.shape_cast %14 : vector<16x64xbf16> to vector<2x8x64xbf16>
    %c0_12 = arith.constant 0 : index
    %c8 = arith.constant 8 : index
    %c0_13 = arith.constant 0 : index
    %16 = vector.load %arg11[%c0_12, %c8, %c0_13] : memref<2x18x64xbf16, #tpu.memory_space<vmem>>, vector<2x8x64xbf16>
    tpu.vector_store %arg11[%c0_12, %c8, %c0_13], %15 {strides = array<i32>} : memref<2x18x64xbf16, #tpu.memory_space<vmem>>, vector<2x8x64xbf16>,
    %c0_14 = arith.constant 0 : index
    %c7 = arith.constant 7 : index
    %c0_15 = arith.constant 0 : index
    %17 = vector.load %arg11[%c0_14, %c7, %c0_15] : memref<2x18x64xbf16, #tpu.memory_space<vmem>>, vector<2x8x64xbf16>
    %18 = vector.shape_cast %17 : vector<2x8x64xbf16> to vector<16x64xbf16>
    %c0_16 = arith.constant 0 : index
    %c0_17 = arith.constant 0 : index
    %c0_18 = arith.constant 0 : index
    %19 = vector.load %arg5[%c0_16, %c0_17, %c0_18] : memref<3x64x128xbf16, #tpu.memory_space<vmem>>, vector<1x64x128xbf16>
    %20 = vector.shape_cast %19 : vector<1x64x128xbf16> to vector<64x128xbf16>
    %cst_19 = arith.constant dense<0.000000e+00> : vector<16x128xf32>
    %21 = tpu.matmul %18, %20, %cst_19 {dimension_numbers = #tpu.dot_dimension_numbers<[1], [0], [0], [1], [0, 0, 1, 1], [], []>} : vector<16x64xbf16>, vector<64x128xbf16>, vector<16x128xf32> -> vector<16x128xf32>
    %c0_20 = arith.constant 0 : index
    %c8_21 = arith.constant 8 : index
    %c0_22 = arith.constant 0 : index
    %22 = vector.load %arg11[%c0_20, %c8_21, %c0_22] : memref<2x18x64xbf16, #tpu.memory_space<vmem>>, vector<2x8x64xbf16>
    %23 = vector.shape_cast %22 : vector<2x8x64xbf16> to vector<16x64xbf16>
    %c1 = arith.constant 1 : index
    %c0_23 = arith.constant 0 : index
    %c0_24 = arith.constant 0 : index
    %24 = vector.load %arg5[%c1, %c0_23, %c0_24] : memref<3x64x128xbf16, #tpu.memory_space<vmem>>, vector<1x64x128xbf16>
    %25 = vector.shape_cast %24 : vector<1x64x128xbf16> to vector<64x128xbf16>
    %cst_25 = arith.constant dense<0.000000e+00> : vector<16x128xf32>
    %26 = tpu.matmul %23, %25, %cst_25 {dimension_numbers = #tpu.dot_dimension_numbers<[1], [0], [0], [1], [0, 0, 1, 1], [], []>} : vector<16x64xbf16>, vector<64x128xbf16>, vector<16x128xf32> -> vector<16x128xf32>
    %27 = arith.addf %21, %26 : vector<16x128xf32>
    %c0_26 = arith.constant 0 : index
    %c9 = arith.constant 9 : index
    %c0_27 = arith.constant 0 : index
    %28 = vector.load %arg11[%c0_26, %c9, %c0_27] : memref<2x18x64xbf16, #tpu.memory_space<vmem>>, vector<2x8x64xbf16>
    %29 = vector.shape_cast %28 : vector<2x8x64xbf16> to vector<16x64xbf16>
    %c2 = arith.constant 2 : index
    %c0_28 = arith.constant 0 : index
    %c0_29 = arith.constant 0 : index
    %30 = vector.load %arg5[%c2, %c0_28, %c0_29] : memref<3x64x128xbf16, #tpu.memory_space<vmem>>, vector<1x64x128xbf16>
    %31 = vector.shape_cast %30 : vector<1x64x128xbf16> to vector<64x128xbf16>
    %cst_30 = arith.constant dense<0.000000e+00> : vector<16x128xf32>
    %32 = tpu.matmul %29, %31, %cst_30 {dimension_numbers = #tpu.dot_dimension_numbers<[1], [0], [0], [1], [0, 0, 1, 1], [], []>} : vector<16x64xbf16>, vector<64x128xbf16>, vector<16x128xf32> -> vector<16x128xf32>
    %33 = arith.addf %27, %32 : vector<16x128xf32>
    %c0_31 = arith.constant 0 : index
    %c0_32 = arith.constant 0 : index
    %34 = vector.load %arg6[%c0_31, %c0_32] : memref<1x128xf32, #tpu.memory_space<vmem>>, vector<1x128xf32>
    %35 = vector.broadcast %34 : vector<1x128xf32> to vector<16x128xf32>
    %36 = arith.addf %33, %35 : vector<16x128xf32>
    %cst_33 = arith.constant 0.000000e+00 : f32
    %37 = vector.broadcast %cst_33 : f32 to vector<16x128xf32>
    %38 = arith.cmpf ogt, %36, %37 : vector<16x128xf32>
    %cst_34 = arith.constant 1.000000e-01 : f32
    %39 = vector.broadcast %cst_34 : f32 to vector<16x128xf32>
    %40 = arith.mulf %39, %36 : vector<16x128xf32>
    %41 = arith.select %38, %36, %40 : vector<16x128xi1>, vector<16x128xf32>
    %c0_35 = arith.constant 0 : index
    %c0_36 = arith.constant 0 : index
    %42 = vector.load %arg1[%c0_35, %c0_36] : memref<16x64xbf16, #tpu.memory_space<vmem>>, vector<16x64xbf16>
    %c0_37 = arith.constant 0 : index
    %c0_38 = arith.constant 0 : index
    %43 = vector.load %arg7[%c0_37, %c0_38] : memref<64x128xbf16, #tpu.memory_space<vmem>>, vector<64x128xbf16>
    %cst_39 = arith.constant dense<0.000000e+00> : vector<16x128xf32>
    %44 = tpu.matmul %42, %43, %cst_39 {dimension_numbers = #tpu.dot_dimension_numbers<[1], [0], [0], [1], [0, 0, 1, 1], [], []>} : vector<16x64xbf16>, vector<64x128xbf16>, vector<16x128xf32> -> vector<16x128xf32>
    %45 = arith.truncf %41 : vector<16x128xf32> to vector<16x128xbf16>
    %c0_40 = arith.constant 0 : index
    %c0_41 = arith.constant 0 : index
    %46 = vector.load %arg8[%c0_40, %c0_41] : memref<128x128xbf16, #tpu.memory_space<vmem>>, vector<128x128xbf16>
    %cst_42 = arith.constant dense<0.000000e+00> : vector<16x128xf32>
    %47 = tpu.matmul %45, %46, %cst_42 {dimension_numbers = #tpu.dot_dimension_numbers<[1], [0], [0], [1], [0, 0, 1, 1], [], []>} : vector<16x128xbf16>, vector<128x128xbf16>, vector<16x128xf32> -> vector<16x128xf32>
    %48 = arith.addf %44, %47 : vector<16x128xf32>
    %c0_43 = arith.constant 0 : index
    %c0_44 = arith.constant 0 : index
    %49 = vector.load %arg9[%c0_43, %c0_44] : memref<1x128xf32, #tpu.memory_space<vmem>>, vector<1x128xf32>
    %50 = vector.broadcast %49 : vector<1x128xf32> to vector<16x128xf32>
    %51 = arith.addf %48, %50 : vector<16x128xf32>
    %cst_45 = arith.constant 0.000000e+00 : f32
    %52 = vector.broadcast %cst_45 : f32 to vector<16x128xf32>
    %53 = arith.cmpf ogt, %51, %52 : vector<16x128xf32>
    %cst_46 = arith.constant 1.000000e-01 : f32
    %54 = vector.broadcast %cst_46 : f32 to vector<16x128xf32>
    %55 = arith.mulf %54, %51 : vector<16x128xf32>
    %56 = arith.select %53, %51, %55 : vector<16x128xi1>, vector<16x128xf32>
    %c0_47 = arith.constant 0 : index
    %c0_48 = arith.constant 0 : index
    %57 = vector.load %arg10[%c0_47, %c0_48] : memref<16x128xf32, #tpu.memory_space<vmem>>, vector<16x128xf32>
    tpu.vector_store %arg10[%c0_47, %c0_48], %56 {strides = array<i32>} : memref<16x128xf32, #tpu.memory_space<vmem>>, vector<16x128xf32>,
    return
  }
  func.func @transform_0(%arg0: i32) -> (i32, i32) {
    %c0_i32 = arith.constant 0 : i32
    %c0_i32_0 = arith.constant 0 : i32
    return %arg0, %c0_i32 : i32, i32
  }
  func.func @transform_1(%arg0: i32) -> (i32, i32) {
    %c0_i32 = arith.constant 0 : i32
    %c0_i32_0 = arith.constant 0 : i32
    return %arg0, %c0_i32 : i32, i32
  }
  func.func @transform_2(%arg0: i32) -> (i32, i32) {
    %c0_i32 = arith.constant 0 : i32
    %c0_i32_0 = arith.constant 0 : i32
    %c0_i32_1 = arith.constant 0 : i32
    return %c0_i32, %c0_i32_0 : i32, i32
  }
  func.func @transform_3(%arg0: i32) -> (i32, i32) {
    %c0_i32 = arith.constant 0 : i32
    %c0_i32_0 = arith.constant 0 : i32
    %c0_i32_1 = arith.constant 0 : i32
    return %c0_i32, %c0_i32_0 : i32, i32
  }
  func.func @transform_4(%arg0: i32) -> (i32, i32, i32) {
    %c0_i32 = arith.constant 0 : i32
    %c0_i32_0 = arith.constant 0 : i32
    %c0_i32_1 = arith.constant 0 : i32
    %c0_i32_2 = arith.constant 0 : i32
    return %c0_i32, %c0_i32_0, %c0_i32_1 : i32, i32, i32
  }
  func.func @transform_5(%arg0: i32) -> (i32, i32) {
    %c0_i32 = arith.constant 0 : i32
    %c0_i32_0 = arith.constant 0 : i32
    %c0_i32_1 = arith.constant 0 : i32
    return %c0_i32, %c0_i32_0 : i32, i32
  }
  func.func @transform_6(%arg0: i32) -> (i32, i32) {
    %c0_i32 = arith.constant 0 : i32
    %c0_i32_0 = arith.constant 0 : i32
    %c0_i32_1 = arith.constant 0 : i32
    return %c0_i32, %c0_i32_0 : i32, i32
  }
  func.func @transform_7(%arg0: i32) -> (i32, i32) {
    %c0_i32 = arith.constant 0 : i32
    %c0_i32_0 = arith.constant 0 : i32
    %c0_i32_1 = arith.constant 0 : i32
    return %c0_i32, %c0_i32_0 : i32, i32
  }
  func.func @transform_8(%arg0: i32) -> (i32, i32) {
    %c0_i32 = arith.constant 0 : i32
    %c0_i32_0 = arith.constant 0 : i32
    %c0_i32_1 = arith.constant 0 : i32
    return %c0_i32, %c0_i32_0 : i32, i32
  }
  func.func @transform_9(%arg0: i32) -> (i32, i32) {
    %c0_i32 = arith.constant 0 : i32
    %c0_i32_0 = arith.constant 0 : i32
    return %arg0, %c0_i32 : i32, i32
  }
}

</mosaic_0001>

<bundles_post_ra>
// kernel: pool_proj_cat_proj_forward.1
= control target key start
LH: loop header
LB: loop body
LE: loop exit
PB: predicated region body
PF: predicated region fallthrough
CT: control target
= control target key end

     0   :  { %s1500_s30 = smov 0   ;;  %s1700_s0 = inlined_call_operand.vmem [shape: bf16[32,64], index: 0, kind: input, shape index: {}]   ;;  %s1701_s1 = inlined_call_operand.vmem [shape: bf16[32,256], index: 1, kind: input, shape index: {}]   ;;  %s1702_s2 = inlined_call_operand.vmem [shape: bf16[256,64], index: 2, kind: input, shape index: {}]   ;;  %s1703_s3 = inlined_call_operand.vmem [shape: f32[1,64], index: 3, kind: input, shape index: {}]   ;;  %s1704_s4 = inlined_call_operand.vmem [shape: bf16[3,64,128], index: 4, kind: input, shape index: {}]   ;;  %s1705_s5 = inlined_call_operand.vmem [shape: f32[1,128], index: 5, kind: input, shape index: {}]   ;;  %s1706_s6 = inlined_call_operand.vmem [shape: bf16[64,128], index: 6, kind: input, shape index: {}]   ;;  %s1707_s7 = inlined_call_operand.vmem [shape: bf16[128,128], index: 7, kind: input, shape index: {}]   ;;  %s1708_s8 = inlined_call_operand.vmem [shape: f32[1,128], index: 8, kind: input, shape index: {}]   ;;  %s1709_s9 = inlined_call_operand.vmem [shape: f32[32,128], index: 9, kind: output, shape index: {}]  }
   0x1 LB: > { %s1174_s10 = sadd.s32 4294967295, %s1445_s30   ;;  %p1178_p0 = scmp.ge.s32.totalorder %s1445_s30, 1  ;;  %s1445_s30 = sphi %s1500_s30, %s19_s30  }
   0x2   : > { %p300_p1 = scmp.lt.s32.totalorder %s1445_s30, 3 }
   0x4   : > { %p301_p2 = pnand %p1178_p0, %p300_p1 }
   0x5   : > { %v1394_v0 = vld [vmem:[%s1702_s2 + $0x40] sm:$0xff] (!%p301_p2)   ;;  %s1179_s13 = sshll.u32 (!%p301_p2), %s1174_s10, 1  ;;  %v1396_v2 = vld [vmem:[%s1702_s2 + $0x48] sm:$0xff] (!%p301_p2)   ;;  %v1398_v4 = vld [vmem:[%s1702_s2 + $0x50] sm:$0xff] (!%p301_p2)   ;;  %v1447_v19 = vmov (!%p301_p2), 0.0   ;;  %vm556_vm0 = vcmask (!%p301_p2), 519171  }
   0x6   : > { %304 = sbr.rel (%p301_p2) target bundleno = 735 (0x2df), region = 56  ;;  %v1395_v1 = vld [vmem:[%s1702_s2] sm:$0xff] (!%p301_p2)   ;;  %1264 = vmatprep.subr.bf16.mxu0 (!%p301_p2), %v1394_v0  ;;  %v1397_v3 = vld [vmem:[%s1702_s2 + $0x8] sm:$0xff] (!%p301_p2)   ;;  %p343_p3 = scmp.lt.s32.totalorder (!%p301_p2), %s1179_s13, 3  ;;  %v1399_v5 = vld [vmem:[%s1702_s2 + $0x10] sm:$0xff] (!%p301_p2)   ;;  %1315 = vmatprep.subr.bf16.mxu1 (!%p301_p2), %v1447_v19  ;;  %vm1448_vm1 = vmmov (!%p301_p2), 0  }
   0x7   : > { %1265 = vmatpush3.bf16.msra.mxu0 (!%p301_p2), %v1395_v1  ;;  %v1400_v6 = vld [vmem:[%s1702_s2 + $0x58] sm:$0xff] (!%p301_p2)   ;;  %v1402_v8 = vld [vmem:[%s1702_s2 + $0x60] sm:$0xff] (!%p301_p2)   ;;  %v1404_v10 = vld [vmem:[%s1702_s2 + $0x68] sm:$0xff] (!%p301_p2)   ;;  %1323 = vmatprep.mubr.msk.bf16.mxu1 (!%p301_p2), %vm1448_vm1, %v1447_v19  ;;  %v1449_v23 = vmov (!%p301_p2), 0   ;;  %vm559_vm2 = vcmask (!%p301_p2), 516096   ;;  %vm570_vm4 = vcmask (!%p301_p2), 519168  }
   0x8   : > { %1266 = vmatprep.subr.bf16.mxu0 (!%p301_p2), %v1396_v2  ;;  %v1401_v7 = vld [vmem:[%s1702_s2 + $0x18] sm:$0xff] (!%p301_p2)   ;;  %v1403_v9 = vld [vmem:[%s1702_s2 + $0x20] sm:$0xff] (!%p301_p2)   ;;  %v1405_v11 = vld [vmem:[%s1702_s2 + $0x28] sm:$0xff] (!%p301_p2)   ;;  %557 = vst.msk [vmem:[#allocation2] sm:$0x8] (!%p301_p2), %vm556_vm0, %v1449_v23  ;;  %vm652_vm6 = vcmask (!%p301_p2), 523264  }
   0x9   : > { %v1406_v13 = vld [vmem:[%s1702_s2 + $0x70] sm:$0xff] (!%p301_p2)   ;;  %v1408_v15 = vld [vmem:[%s1702_s2 + $0x78] sm:$0xff] (!%p301_p2)   ;;  %v1414_v18 = vld [vmem:[%s1704_s4 + $0x20] sm:$0xff] (!%p301_p2)   ;;  %558 = vst.msk [vmem:[#allocation2 + $0xc] sm:$0x8] (!%p301_p2), %vm556_vm0, %v1449_v23 }
   0xa   : > { %v1407_v14 = vld [vmem:[%s1702_s2 + $0x30] sm:$0xff] (!%p301_p2)   ;;  %v1409_v16 = vld [vmem:[%s1702_s2 + $0x38] sm:$0xff] (!%p301_p2)   ;;  %1316 = vmatpush3.bf16.msra.mxu1 (!%p301_p2), %v1414_v18  ;;  %v1415_v20 = vld [vmem:[%s1704_s4 + $0x28] sm:$0xff] (!%p301_p2)   ;;  %560 = vst.msk [vmem:[#allocation2 + $0x8] sm:$0x1] (!%p301_p2), %vm559_vm2, %v1449_v23 }
   0xb   : > { %1267 = vmatpush3.bf16.msra.mxu0 (!%p301_p2), %v1397_v3  ;;  %1317 = vmatprep.subr.bf16.mxu1 (!%p301_p2), %v1447_v19  ;;  %v1416_v21 = vld [vmem:[%s1704_s4 + $0x30] sm:$0xff] (!%p301_p2)   ;;  %v1417_v22 = vld [vmem:[%s1704_s4 + $0x40] sm:$0xff] (!%p301_p2)   ;;  %v1418_v24 = vld [vmem:[%s1704_s4 + $0x38] sm:$0xff] (!%p301_p2)   ;;  %561 = vst.msk [vmem:[#allocation2 + $0x14] sm:$0x1] (!%p301_p2), %vm559_vm2, %v1449_v23 }
   0xc   : > { %1268 = vmatprep.subr.bf16.mxu0 (!%p301_p2), %v1398_v4  ;;  %v1419_v25 = vld [vmem:[%s1704_s4 + $0x48] sm:$0xff] (!%p301_p2)   ;;  %v1422_v26 = vld [vmem:[%s1704_s4 + $0x50] sm:$0xff] (!%p301_p2)   ;;  %v1424_v27 = vld [vmem:[%s1704_s4 + $0x58] sm:$0xff] (!%p301_p2)   ;;  %vm772_vm7 = vsmask.f32 (!%p301_p2), 3328 }
   0xd   : > { %s1711_s13 = smov (!%p343_p3, %s1179_s13), 3  ;;  %v1186_v29 = vld [vmem:[%s1703_s3] ss:$0 sm:$0xff]  ;;  %vm773_vm8 = vsmask.f32 7440  ;;  %v1423_v62 = vld [vmem:[%s1704_s4 + $0x8] sm:$0xff]  }
   0xe   : > { %s1261_s28 = sshll.u32 %s1711_s13, 3  ;;  %s1180_s11 = sshll.u32 %s1711_s13, 2  ;;  %1318 = vmatpush3.bf16.msra.mxu1 %v1415_v20  ;;  %v1421_v46 = vld [vmem:[%s1704_s4] sm:$0xff]   ;;  %vm774_vm9 = vmor %vm772_vm7, %vm773_vm8  ;;  %vm577_vm10 = vsmask.f32 256 }
   0xf   : > { %1269 = vmatpush3.bf16.msra.mxu0 %v1399_v5  ;;  %s353_s15 = scalar_lea.vmem %s1701_s1, %s1261_s28  ;;  %s1553_s22 = scalar_lea.vmem %s1700_s0, %s1180_s11  ;;  %1319 = vmatprep.subr.bf16.mxu1 %v1447_v19  ;;  %v573_v3 = vld [vmem:[#allocation2] sm:$0x8]  ;;  %vm578_vm11 = vsmask.f32 4368 }
  0x10   : > { %1270 = vmatprep.subr.bf16.mxu0 %v1400_v6  ;;  %v1412_v12 = vld [vmem:[%s353_s15 + $0x4] ss:$8 sps:$4 sm:$0xff]   ;;  %v1410_v17 = vld [vmem:[%s353_s15] ss:$8 sps:$4 sm:$0xff]   ;;  %vm579_vm12 = vmor %vm577_vm10, %vm578_vm11  ;;  %s359_s15 = scalar_lea.vmem %s1709_s9, %s1261_s28 }
  0x11   : > { %541 = vmatprep.mubr.bf16.mxu0 %v1412_v12  ;;  %v769_v44 = vld [vmem:[#allocation2 + $0x8] sm:$0x1]  ;;  %v575_v60 = vld [vmem:[#allocation2 + $0xc] sm:$0x8] }
  0x12   : > { %1320 = vmatpush3.bf16.msra.mxu1 %v1416_v21  ;;  %v771_v45 = vld [vmem:[#allocation2 + $0x14] sm:$0x1]  ;;  %v785_v54 = vshll.u32 %v769_v44, 16  ;;  %v594_v4 = vshrl.u32 %v575_v60, 16 }
  0x13   : > { %1271 = vmatpush3.bf16.msra.mxu0 %v1401_v7  ;;  %1321 = vmatprep.subr.bf16.mxu1 %v1447_v19  ;;  %v799_v55 = vshll.u32 %v771_v45, 16 }
  0x14   : > { %1272 = vmatprep.subr.bf16.mxu0 %v1402_v8  ;;  %v787_v2 = vrot.slane %v785_v54, 5 }
  0x15   : > { %v801_v8 = vrot.slane %v799_v55, 5 }
  0x16   : > { %1322 = vmatpush3.bf16.msra.mxu1 %v1418_v24 }
  0x17   : > { %1273 = vmatpush3.bf16.msra.mxu0 %v1403_v9  ;;  %1327 = vmatprep.subr.bf16.mxu1 %v1447_v19 }
  0x18   : > { %1274 = vmatprep.subr.bf16.mxu0 %v1404_v10 }
  0x1b   : > { %1275 = vmatpush3.bf16.msra.mxu0 %v1405_v11  ;;  %v1425_v11 = vld [vmem:[%s1704_s4 + $0x10] sm:$0xff]  }
  0x1c   : > { %1276 = vmatprep.subr.bf16.mxu0 %v1406_v13  ;;  %v581_v13 = vshrl.u32 %v573_v3, 16 }
  0x1e   : > { %v1207_v23 = vrot.slane %v581_v13, 11 }
  0x1f   : > { %1277 = vmatpush3.bf16.msra.mxu0 %v1407_v14  ;;  %v1208_v14 = vrot.slane %v594_v4, 11  ;;  %v1258_v4 = vld [vmem:[%s1708_s8] ss:$0 sm:$0xff] }
  0x20   : > { %1278 = vmatprep.subr.bf16.mxu0 %v1408_v15 }
  0x23   : > { %1279 = vmatpush3.bf16.msra.mxu0 %v1409_v16 }
  0x24   : > { %1339 = vmatprep.subr.bf16.mxu0 %v1447_v19 }
  0x26   : > { %542 = vmatmul.mubr.bf16.vlgmr.msra.gmra.mrb[0].mxu0 %v1410_v17 }
  0x27   : > { %1347 = vmatprep.mubr.msk.bf16.mxu0 %vm1448_vm1, %v1447_v19  ;;  %1340 = vmatpush3.bf16.msra.mxu0 %v1417_v22  ;;  %v1426_v22 = vld [vmem:[%s1704_s4 + $0x18] sm:$0xff]  }
  0x28   : > { %1341 = vmatprep.subr.bf16.mxu0 %v1447_v19 }
  0x2b   : > { %1342 = vmatpush3.bf16.msra.mxu0 %v1419_v25 }
  0x2c   : > { %1343 = vmatprep.subr.bf16.mxu0 %v1447_v19 }
  0x2f   : > { %1344 = vmatpush3.bf16.msra.mxu0 %v1422_v26  ;;  %v1427_v26 = vld [vmem:[%s1707_s7] sm:$0xff]  }
  0x30   : > { %1345 = vmatprep.subr.bf16.mxu0 %v1447_v19 }
  0x33   : > { %1346 = vmatpush3.bf16.msra.mxu0 %v1424_v27 }
  0x34   : > { %1371 = vmatprep.subr.bf16.mxu0 %v1447_v19 }
  0xf9   : > { %v1280_v28 = vpop.f32.mrb[0].mxu0 }
  0xfa   : > { %v1281_v30 = vpop.f32.mrb[1].mxu0 }
  0xfb   : > { %v1282_v31 = vadd.f32 %v1281_v30, %v1280_v28  ;;  %v1283_v32 = vpop.f32.mrb[2].mxu0  ;;  %v1428_v28 = vld [vmem:[%s1707_s7 + $0x8] sm:$0xff]   ;;  %v1430_v30 = vld [vmem:[%s1707_s7 + $0x18] sm:$0xff]  }
  0xfc   : > { %v1284_v33 = vpop.f32.mrb[3].mxu0 }
  0xfd   : > { %v544_v34 = vadd.f32 %v1282_v31, %v1186_v29  ;;  %v1285_v35 = vadd.f32 %v1284_v33, %v1283_v32  ;;  %v1431_v31 = vld [vmem:[%s1706_s6] sm:$0xff]   ;;  %v1433_v33 = vld [vmem:[%s1706_s6 + $0x8] sm:$0xff]  }
  0xfe   : > { %v1432_v32 = vld [vmem:[%s1707_s7 + $0x20] sm:$0xff]  }
  0xff   : > { %vm550_vm3 = vcmp.gt.f32.partialorder %v544_v34, 0.0  ;;  %v552_v36 = vmul.f32 0.1, %v544_v34  ;;  %v547_v37 = vadd.f32 %v1285_v35, %v1186_v29  ;;  %v1429_v29 = vld [vmem:[%s1707_s7 + $0x10] sm:$0xff]  }
 0x100   : > { %v1435_v35 = vld [vmem:[%s1706_s6 + $0x10] sm:$0xff]  }
 0x101   : > { %v554_v38 = vsel %vm550_vm3, %v544_v34, %v552_v36  ;;  %vm551_vm5 = vcmp.gt.f32.partialorder %v547_v37, 0.0  ;;  %v553_v39 = vmul.f32 0.1, %v547_v37  ;;  %v1434_v34 = vld [vmem:[%s1707_s7 + $0x28] sm:$0xff]   ;;  %v1436_v36 = vld [vmem:[%s1707_s7 + $0x30] sm:$0xff]  }
 0x102   : > { %v1262_v40 = vpack.c.bf16 %v554_v38, %v554_v38  ;;  %v1413_v38 = vld [vmem:[%s1553_s22] sm:$0xff]  }
 0x103   : > { %v555_v41 = vsel %vm551_vm5, %v547_v37, %v553_v39  ;;  %v1437_v37 = vld [vmem:[%s1706_s6 + $0x18] sm:$0xff]  }
 0x104   : > { %571 = vst.msk [vmem:[#allocation2 + $0x4] sm:$0xf] %vm570_vm4, %v1262_v40  ;;  %v1263_v42 = vpack.c.bf16 %v555_v41, %v555_v41  ;;  %v1438_v39 = vld [vmem:[%s1707_s7 + $0x38] sm:$0xff]  }
 0x106   : > { %572 = vst.msk [vmem:[#allocation2 + $0x10] sm:$0xf] %vm570_vm4, %v1263_v42 }
 0x10b   : > { %v768_v43 = vld [vmem:[#allocation2 + $0x4] sm:$0xf] }
 0x10c   : > { %v776_v47 = vshrl.u32 %v768_v43, 16  ;;  %v779_v48 = vshll.u32 %v768_v43, 16  ;;  %v574_v49 = vld [vmem:[#allocation2 + $0x4] sm:$0xf] }
 0x10d   : > { %v576_v50 = vld [vmem:[#allocation2 + $0x10] sm:$0xf]  ;;  %v586_v61 = vshrl.u32 %v574_v49, 16  ;;  %v589_v15 = vshll.u32 %v574_v49, 16 }
 0x10e   : > { %v770_v51 = vld [vmem:[#allocation2 + $0x10] sm:$0xf]  ;;  %v599_v52 = vshrl.u32 %v576_v50, 16  ;;  %v1217_v53 = vcombine.low %v574_v49, %v576_v50  ;;  %v778_v56 = vrot.slane %v776_v47, 4  ;;  %v781_v57 = vrot.slane %v779_v48, 5 }
 0x10f   : > { %v790_v58 = vshrl.u32 %v770_v51, 16  ;;  %v793_v59 = vshll.u32 %v770_v51, 16  ;;  %v588_v9 = vrot.slane %v586_v61, 7  ;;  %v602_v10 = vshll.u32 %v576_v50, 16 }
 0x110   : > { %1324 = vmatmul.mubr.msk.bf16.vlgmr.msra.gmra.mrb[0].mxu1 %vm652_vm6, %v1217_v53  ;;  %v782_v63 = vor.u32 %v781_v57, %v778_v56  ;;  %v601_v5 = vrot.slane %v599_v52, 7 }
 0x111   : > { %1328 = vmatpush3.bf16.msra.mxu1 %v1421_v46  ;;  %v792_v0 = vrot.slane %v790_v58, 4  ;;  %v795_v1 = vrot.slane %v793_v59, 5  ;;  %1335 = vmatprep.mubr.msk.bf16.mxu1 %vm1448_vm1, %v1447_v19  ;;  %v591_v21 = vor.u32 %v589_v15, %v588_v9 }
 0x112   : > { %1329 = vmatprep.subr.bf16.mxu1 %v1447_v19  ;;  %v783_v6 = vrot.slane %v782_v63, 4  ;;  %v604_v16 = vor.u32 %v602_v10, %v601_v5 }
 0x113   : > { %v796_v7 = vor.u32 %v795_v1, %v792_v0  ;;  %v592_v25 = vsel %vm579_vm12, %v1207_v23, %v591_v21 }
 0x114   : > { %v788_v17 = vsel %vm774_vm9, %v783_v6, %v787_v2  ;;  %v605_v24 = vsel %vm579_vm12, %v1208_v14, %v604_v16 }
 0x115   : > { %1330 = vmatpush3.bf16.msra.mxu1 %v1423_v62  ;;  %v797_v12 = vrot.slane %v796_v7, 4  ;;  %v1223_v27 = vcombine.low %v592_v25, %v605_v24 }
 0x116   : > { %1331 = vmatprep.subr.bf16.mxu1 %v1447_v19 }
 0x117   : > { %v802_v18 = vsel %vm774_vm9, %v797_v12, %v801_v8 }
 0x118   : > { %v1237_v20 = vcombine.low %v788_v17, %v802_v18 }
 0x119   : > { %1332 = vmatpush3.bf16.msra.mxu1 %v1425_v11 }
 0x11a   : > { %1348 = vmatmul.mubr.msk.bf16.vlgmr.msra.gmra.mrb[4].mxu0 %vm652_vm6, %v1237_v20  ;;  %1333 = vmatprep.subr.bf16.mxu1 %v1447_v19 }
 0x11b   : > { %1379 = vmatprep.mubr.msk.bf16.mxu0 %vm1448_vm1, %v1447_v19  ;;  %1372 = vmatpush3.bf16.msra.mxu0 %v1431_v31 }
 0x11c   : > { %1373 = vmatprep.subr.bf16.mxu0 %v1447_v19 }
 0x11d   : > { %1334 = vmatpush3.bf16.msra.mxu1 %v1426_v22 }
 0x11e   : > { %1351 = vmatprep.subr.bf16.mxu1 %v1447_v19 }
 0x11f   : > { %1374 = vmatpush3.bf16.msra.mxu0 %v1433_v33 }
 0x120   : > { %1336 = vmatmul.mubr.msk.bf16.vlgmr.msra.gmra.mrb[4].mxu1 %vm652_vm6, %v1223_v27  ;;  %1375 = vmatprep.subr.bf16.mxu0 %v1447_v19 }
 0x121   : > { %1352 = vmatpush3.bf16.msra.mxu1 %v1427_v26  ;;  %1367 = vmatprep.mubr.msk.bf16.mxu1 %vm1448_vm1, %v1447_v19 }
 0x122   : > { %1353 = vmatprep.subr.bf16.mxu1 %v1447_v19 }
 0x123   : > { %1376 = vmatpush3.bf16.msra.mxu0 %v1435_v35 }
 0x124   : > { %1377 = vmatprep.subr.bf16.mxu0 %v1447_v19 }
 0x125   : > { %1354 = vmatpush3.bf16.msra.mxu1 %v1428_v28 }
 0x126   : > { %1355 = vmatprep.subr.bf16.mxu1 %v1447_v19 }
 0x127   : > { %1378 = vmatpush3.bf16.msra.mxu0 %v1437_v37 }
 0x129   : > { %1356 = vmatpush3.bf16.msra.mxu1 %v1429_v29 }
 0x12a   : > { %1357 = vmatprep.subr.bf16.mxu1 %v1447_v19  ;;  %1380 = vmatmul.mubr.msk.bf16.vlgmr.msra.gmra.mrb[8].mxu0 %vm652_vm6, %v1413_v38 }
 0x12d   : > { %1358 = vmatpush3.bf16.msra.mxu1 %v1430_v30 }
 0x12e   : > { %1359 = vmatprep.subr.bf16.mxu1 %v1447_v19 }
 0x131   : > { %1360 = vmatpush3.bf16.msra.mxu1 %v1432_v32 }
 0x132   : > { %1361 = vmatprep.subr.bf16.mxu1 %v1447_v19 }
 0x135   : > { %1362 = vmatpush3.bf16.msra.mxu1 %v1434_v34 }
 0x136   : > { %1363 = vmatprep.subr.bf16.mxu1 %v1447_v19 }
 0x139   : > { %1364 = vmatpush3.bf16.msra.mxu1 %v1436_v36 }
 0x13a   : > { %1365 = vmatprep.subr.bf16.mxu1 %v1447_v19  ;;  %v1243_v19 = vld [vmem:[%s1705_s5] ss:$0 sm:$0xff] }
 0x13d   : > { %1366 = vmatpush3.bf16.msra.mxu1 %v1438_v39 }
 0x1e3   : > { %v690_v40 = vpop.f32.mrb[0].mxu1 }
 0x1e4   : > { %v1325_v41 = vpop.f32.mrb[1].mxu1 }
 0x1e5   : > { %v693_v42 = vpop.f32.mrb[2].mxu1 }
 0x1e6   : > { %v1326_v43 = vpop.f32.mrb[3].mxu1 }
 0x1ed   : > { %v876_v44 = vpop.f32.mrb[4].mxu0 }
 0x1ee   : > { %v1349_v45 = vpop.f32.mrb[5].mxu0 }
 0x1ef   : > { %v879_v46 = vpop.f32.mrb[6].mxu0 }
 0x1f0   : > { %v1350_v47 = vpop.f32.mrb[7].mxu0 }
 0x1f3   : > { %v761_v48 = vpop.f32.mrb[4].mxu1 }
 0x1f4   : > { %v762_v49 = vadd.f32 %v761_v48, %v690_v40  ;;  %v1337_v50 = vpop.f32.mrb[5].mxu1 }
 0x1f5   : > { %v764_v51 = vpop.f32.mrb[6].mxu1 }
 0x1f6   : > { %v883_v52 = vadd.f32 %v876_v44, %v762_v49  ;;  %v765_v53 = vadd.f32 %v764_v51, %v693_v42  ;;  %v1338_v54 = vpop.f32.mrb[7].mxu1 }
 0x1f8   : > { %v892_v55 = vadd.f32 %v1243_v19, %v883_v52  ;;  %v884_v56 = vadd.f32 %v879_v46, %v765_v53 }
 0x1fa   : > { %v896_v57 = vmul.f32 0.1, %v892_v55  ;;  %v893_v58 = vadd.f32 %v1243_v19, %v884_v56  ;;  %vm894_vm13 = vcmp.gt.f32.partialorder %v892_v55, 0.0 }
 0x1fc   : > { %vm895_vm14 = vcmp.gt.f32.partialorder %v893_v58, 0.0  ;;  %v897_v59 = vmul.f32 0.1, %v893_v58  ;;  %v898_v60 = vsel %vm894_vm13, %v892_v55, %v896_v57 }
 0x1fd   : > { %v1082_v63 = vpop.f32.mrb[8].mxu0 }
 0x1fe   : > { %v899_v61 = vsel %vm895_vm14, %v893_v58, %v897_v59  ;;  %v1381_v0 = vpop.f32.mrb[9].mxu0 }
 0x1ff   : > { %v910_v62 = vpack.c.bf16 %v899_v61, %v898_v60  ;;  %v1085_v1 = vpop.f32.mrb[10].mxu0 }
 0x200   : > { %v1382_v2 = vpop.f32.mrb[11].mxu0 }
 0x201   : > { %1368 = vmatmul.mubr.bf16.vlgmr.msra.gmra.mrb[8].mxu1 %v910_v62 }
 0x2d4   : > { %v1009_v3 = vpop.f32.mrb[8].mxu1 }
 0x2d5   : > { %v1083_v5 = vadd.f32 %v1082_v63, %v1009_v3  ;;  %v1369_v6 = vpop.f32.mrb[9].mxu1 }
 0x2d6   : > { %v1012_v7 = vpop.f32.mrb[10].mxu1 }
 0x2d7   : > { %v1096_v8 = vadd.f32 %v1258_v4, %v1083_v5  ;;  %v1086_v9 = vadd.f32 %v1085_v1, %v1012_v7  ;;  %v1370_v10 = vpop.f32.mrb[11].mxu1 }
 0x2d9   : > { %vm1098_vm15 = vcmp.gt.f32.partialorder %v1096_v8, 0.0  ;;  %v1100_v11 = vmul.f32 0.1, %v1096_v8  ;;  %v1097_v12 = vadd.f32 %v1258_v4, %v1086_v9 }
 0x2db   : > { %v1102_v13 = vsel %vm1098_vm15, %v1096_v8, %v1100_v11  ;;  %vm1099_vm0 = vcmp.gt.f32.partialorder %v1097_v12, 0.0  ;;  %v1101_v14 = vmul.f32 0.1, %v1097_v12 }
 0x2dc   : > { %1104 = vst [vmem:[%s359_s15] sm:$0xff] %v1102_v13 }
 0x2dd   : > { %v1103_v15 = vsel %vm1099_vm0, %v1097_v12, %v1101_v14 }
 0x2de   : > { %1105 = vst [vmem:[%s359_s15 + $0x8] sm:$0xff] %v1103_v15 }
 0x2df PF: > { %s19_s30 = sadd.s32 1, %s1445_s30  }
 0x2e0   : > { %p16_p4 = scmp.ge.s32.totalorder %s19_s30, 4  }
 0x2e2   :  { %18 = sbr.rel (!%p16_p4) target bundleno = 1 (0x1), region = 91 }

</bundles_post_ra>
